<compile_context>
chip_gen: v7x
topology: tpu7x:2x2x1
jax: 0.10.0
libtpu: 0.0.40
codegen_flags: <defaults>
</compile_context>

<pallas_src>
import functools

import jax
import jax.numpy as jnp
from jax.experimental import pallas as pl
from jax.experimental.pallas import tpu as pltpu

_LANE = 128
_SUBLANE = 8
_VMEM_TILE_BUDGET = 40 * 1024 * 1024   # per-step footprint target (v7x-safe)
_VMEM_LIMIT = 48 * 1024 * 1024


def _round_up(x, m):
    return (x + m - 1) // m * m


# ----------------------------------------------------------------------------
# Fused PreNorm + Linear kernel:  out = (LayerNorm(x) * gamma + beta) @ W + b
# ----------------------------------------------------------------------------
def _prenorm_linear_kernel(x_ref, g_ref, bln_ref, w_ref, b_ref, o_ref, y_scr,
                           *, eps, inv_d, n_pad):
    # LayerNorm + affine + MXU-dtype cast once per row tile; the result is
    # cached in VMEM scratch and reused for every hidden (j) tile.
    @pl.when(pl.program_id(1) == 0)
    def _():
        x = x_ref[...].astype(jnp.float32)                       # (tr, dp)
        mean = jnp.sum(x, axis=-1, keepdims=True) * inv_d
        xc = x - mean
        ssq = jnp.sum(xc * xc, axis=-1, keepdims=True)
        if n_pad:
            # Zero-padded lanes contribute (0 - mean)^2 each; remove exactly.
            ssq = ssq - n_pad * (mean * mean)
        var = jnp.maximum(ssq * inv_d, 0.0)
        inv_std = jax.lax.rsqrt(var + eps)                       # EUP slot
        y = xc * inv_std
        y = (y * g_ref[...].astype(jnp.float32)
             + bln_ref[...].astype(jnp.float32))
        y_scr[...] = y.astype(y_scr.dtype)

    acc = jnp.dot(y_scr[...], w_ref[...], preferred_element_type=jnp.float32)
    acc = acc + b_ref[...].astype(jnp.float32)
    o_ref[...] = acc.astype(o_ref.dtype)


def _fused_tile_plan(m, dp, hp, *, x_item, out_item, mxu_item,
                     budget=_VMEM_TILE_BUDGET):
    """Pick (row tile, hidden tile) so the per-step VMEM footprint fits."""
    tr = min(256, _round_up(m, _SUBLANE))
    th = hp  # prefer a fully resident weight block (single DMA of W)

    def footprint(tr, th):
        x_b = 2 * tr * dp * x_item          # activation, double-buffered
        w_b = 2 * dp * th * mxu_item        # weight block
        o_b = 2 * tr * th * out_item        # output, double-buffered
        y_b = tr * dp * mxu_item            # cached normalized activation
        p_b = 2 * (2 * dp + th) * 4         # gamma / beta / bias
        return x_b + w_b + o_b + y_b + p_b

    while footprint(tr, th) > budget and th > _LANE:
        th = max(_LANE, _round_up(th // 2, _LANE))
    while footprint(tr, th) > budget and tr > _SUBLANE:
        tr = max(_SUBLANE, _round_up(tr // 2, _SUBLANE))
    return tr, th


def prenorm_linear_prepare(gamma, beta, w, b, *, mxu_dtype=jnp.bfloat16):
    """One-time parameter prep: pad to lane-dense sizes, pre-cast W to the MXU
    dtype.  Hoisted out of the per-call path (no per-step pad/cast traffic)."""
    d, h = w.shape
    dp = _round_up(d, _LANE)
    hp = _round_up(h, _LANE)
    g_p = jnp.pad(gamma.reshape(1, d), ((0, 0), (0, dp - d)))
    bln_p = jnp.pad(beta.reshape(1, d), ((0, 0), (0, dp - d)))
    w_p = jnp.pad(w, ((0, dp - d), (0, hp - h))).astype(mxu_dtype)
    b_p = jnp.pad(b.reshape(1, h), ((0, 0), (0, hp - h))).astype(jnp.float32)
    return dict(g=g_p, bln=bln_p, w=w_p, b=b_p, d=d, h=h, mxu_dtype=mxu_dtype)


def prenorm_linear_apply(x, params, *, eps=1e-5, out_dtype=None):
    """Fused fn(LayerNorm(x)) for fn = Linear(D -> H), single pallas_call."""
    orig_shape = x.shape
    d, h = params["d"], params["h"]
    assert orig_shape[-1] == d
    mxu_dtype = params["mxu_dtype"]
    out_dtype = x.dtype if out_dtype is None else out_dtype

    x2 = x.reshape(-1, d)
    m = x2.shape[0]
    dp = params["g"].shape[1]
    hp = params["w"].shape[1]

    # Lane-pad the activation only when D is not already a multiple of 128
    # (rows are never padded: the ragged last row block relies on Pallas
    # masking and each row's result depends only on that row).
    if dp != d:
        x2 = jnp.pad(x2, ((0, 0), (0, dp - d)))

    tr, th = _fused_tile_plan(
        m, dp, hp,
        x_item=x2.dtype.itemsize,
        out_item=jnp.dtype(out_dtype).itemsize,
        mxu_item=jnp.dtype(mxu_dtype).itemsize)

    grid = (pl.cdiv(m, tr), pl.cdiv(hp, th))
    kernel = functools.partial(_prenorm_linear_kernel, eps=eps,
                               inv_d=1.0 / d, n_pad=dp - d)
    out = pl.pallas_call(
        kernel,
        out_shape=jax.ShapeDtypeStruct((m, hp), out_dtype),
        grid_spec=pltpu.PrefetchScalarGridSpec(
            num_scalar_prefetch=0,
            grid=grid,
            in_specs=[
                pl.BlockSpec((tr, dp), lambda i, j: (i, 0)),
                pl.BlockSpec((1, dp), lambda i, j: (0, 0)),
                pl.BlockSpec((1, dp), lambda i, j: (0, 0)),
                # When th == hp the block index is constant -> W is DMA'd once
                # for the whole kernel (no per-row-tile re-streaming).
                pl.BlockSpec((dp, th), lambda i, j: (0, j)),
                pl.BlockSpec((1, th), lambda i, j: (0, j)),
            ],
            out_specs=pl.BlockSpec((tr, th), lambda i, j: (i, j)),
            scratch_shapes=[pltpu.VMEM((tr, dp), mxu_dtype)],
        ),
        compiler_params=pltpu.CompilerParams(
            # j (hidden) axis must be sequential so the cached normalized
            # activation in scratch is valid across it (esp. v7x megacore).
            dimension_semantics=("parallel", "arbitrary"),
            vmem_limit_bytes=_VMEM_LIMIT,
        ),
    )(x2, params["g"], params["bln"], params["w"], params["b"])

    if hp != h:
        out = out[:, :h]
    return out.reshape(orig_shape[:-1] + (h,))


def prenorm_linear(x, gamma, beta, w, b, *, eps=1e-5,
                   mxu_dtype=jnp.bfloat16, out_dtype=None):
    """Convenience one-shot wrapper (prepare + apply)."""
    params = prenorm_linear_prepare(gamma, beta, w, b, mxu_dtype=mxu_dtype)
    return prenorm_linear_apply(x, params, eps=eps, out_dtype=out_dtype)


# ----------------------------------------------------------------------------
# Standalone LayerNorm kernel (used by the generic PreNorm when `fn` is an
# arbitrary JAX callable that cannot be fused).
# ----------------------------------------------------------------------------
def _layernorm_kernel(x_ref, g_ref, b_ref, o_ref, *, eps, inv_d, n_pad):
    x = x_ref[...].astype(jnp.float32)
    mean = jnp.sum(x, axis=-1, keepdims=True) * inv_d
    xc = x - mean
    ssq = jnp.sum(xc * xc, axis=-1, keepdims=True)
    if n_pad:
        ssq = ssq - n_pad * (mean * mean)
    var = jnp.maximum(ssq * inv_d, 0.0)
    y = xc * jax.lax.rsqrt(var + eps)
    y = y * g_ref[...].astype(jnp.float32) + b_ref[...].astype(jnp.float32)
    o_ref[...] = y.astype(o_ref.dtype)


def layernorm(x, gamma, beta, *, eps=1e-5, max_row_tile=512):
    """LayerNorm over the last dim of x (any leading shape, any row count)."""
    orig_shape = x.shape
    d = orig_shape[-1]
    x2 = x.reshape(-1, d)
    m = x2.shape[0]

    # Lane-dense output: pad D to a multiple of 128 only when needed (keeps
    # the stores as unmasked full-lane vst; math stays exact via inv_d=1/D
    # and zero-padded gamma/beta + the padded-lane variance correction).
    dp = _round_up(d, _LANE)
    if dp != d:
        x2 = jnp.pad(x2, ((0, 0), (0, dp - d)))
    g2 = jnp.pad(gamma.reshape(1, d), ((0, 0), (0, dp - d)))
    b2 = jnp.pad(beta.reshape(1, d), ((0, 0), (0, dp - d)))

    # Byte-budget-derived row tile: double-buffered in + out <= ~28 MiB so the
    # kernel fits comfortably on v7x's 64 MiB VMEM even for large D.
    itm = x2.dtype.itemsize
    budget = 28 * 1024 * 1024
    tr_budget = max(_SUBLANE,
                    (budget // (2 * dp * 2 * itm)) // _SUBLANE * _SUBLANE)
    tr = min(max_row_tile, tr_budget, _round_up(m, _SUBLANE))

    out = pl.pallas_call(
        functools.partial(_layernorm_kernel, eps=eps, inv_d=1.0 / d,
                          n_pad=dp - d),
        out_shape=jax.ShapeDtypeStruct((m, dp), x.dtype),
        grid_spec=pltpu.PrefetchScalarGridSpec(
            num_scalar_prefetch=0,
            grid=(pl.cdiv(m, tr),),
            in_specs=[
                pl.BlockSpec((tr, dp), lambda i: (i, 0)),
                pl.BlockSpec((1, dp), lambda i: (0, 0)),
                pl.BlockSpec((1, dp), lambda i: (0, 0)),
            ],
            out_specs=pl.BlockSpec((tr, dp), lambda i: (i, 0)),
        ),
        compiler_params=pltpu.CompilerParams(
            dimension_semantics=("parallel",),
            vmem_limit_bytes=_VMEM_LIMIT,
        ),
    )(x2, g2, b2)

    if dp != d:
        out = out[:, :d]
    return out.reshape(orig_shape)


# ----------------------------------------------------------------------------
# PreNorm: fn(LayerNorm(x), **kwargs) — generic fallback (unfused).
# ----------------------------------------------------------------------------
def prenorm(x, gamma, beta, fn, **kwargs):
    return fn(layernorm(x, gamma, beta), **kwargs)


if __name__ == "__main__":
    key = jax.random.PRNGKey(0)
    B, N, D, H = 2, 8, 32, 32   # batch, seq, dim, hidden

    kx, kw, kb, kg, kbeta = jax.random.split(key, 5)
    x = jax.random.normal(kx, (B, N, D), dtype=jnp.float32)

    # LayerNorm params (non-trivial so the affine is actually exercised).
    gamma = 1.0 + 0.1 * jax.random.normal(kg, (D,), dtype=jnp.float32)
    beta = 0.1 * jax.random.normal(kbeta, (D,), dtype=jnp.float32)

    # Params for the wrapped fn (Linear D -> H).
    w = jax.random.normal(kw, (D, H), dtype=jnp.float32) * 0.02
    b = jax.random.normal(kb, (H,), dtype=jnp.float32) * 0.02

    # Fused fast path: one-time param prep hoisted out of the call path.
    params = prenorm_linear_prepare(gamma, beta, w, b)
    out = prenorm_linear_apply(x, params)
    jax.block_until_ready(out)

    # Pure-JAX reference.
    mean = jnp.mean(x, axis=-1, keepdims=True)
    var = jnp.mean((x - mean) ** 2, axis=-1, keepdims=True)
    xn = (x - mean) / jnp.sqrt(var + 1e-5) * gamma + beta
    ref = xn @ w + b
    # bf16 MXU operands -> slightly looser tolerance than pure f32 (documented:
    # the fused Linear is not bit-comparable to a f32 PyTorch Linear).
    assert jnp.allclose(out, ref, atol=5e-3, rtol=5e-3), "fused mismatch vs reference"

    # Standalone LN path (used by the generic prenorm()).
    ln_out = layernorm(x, gamma, beta)
    jax.block_until_ready(ln_out)
    assert jnp.allclose(ln_out, xn, atol=1e-4, rtol=1e-4), "layernorm mismatch vs reference"

    print("KERNEL_OK")
</pallas_src>

<mosaic_0001>
module attributes {stable_mosaic.version = 11 : i64} {
  func.func @_prenorm_linear_kernel(%arg0: i32, %arg1: i32, %arg2: memref<16x128xf32, #tpu.memory_space<vmem>>, %arg3: memref<1x128xf32, #tpu.memory_space<vmem>>, %arg4: memref<1x128xf32, #tpu.memory_space<vmem>>, %arg5: memref<128x128xbf16, #tpu.memory_space<vmem>>, %arg6: memref<1x128xf32, #tpu.memory_space<vmem>>, %arg7: memref<16x128xf32, #tpu.memory_space<vmem>>, %arg8: memref<16x128xbf16, #tpu.memory_space<vmem>>) attributes {dimension_semantics = [#tpu.dimension_semantics<parallel>, #tpu.dimension_semantics<arbitrary>], iteration_bounds = array<i64: 1, 1>, scalar_prefetch = 0 : i64, scratch_operands = 1 : i64, tpu.core_type = #tpu.core_type<tc>, window_params = [{transform_indices = @transform_0, window_bounds = array<i64: 16, 128>}, {pipeline_mode = #tpu.pipeline_mode<synchronous>, transform_indices = @transform_1, window_bounds = array<i64: 1, 128>}, {pipeline_mode = #tpu.pipeline_mode<synchronous>, transform_indices = @transform_2, window_bounds = array<i64: 1, 128>}, {transform_indices = @transform_3, window_bounds = array<i64: 128, 128>}, {transform_indices = @transform_4, window_bounds = array<i64: 1, 128>}, {transform_indices = @transform_5, window_bounds = array<i64: 16, 128>}]} {
    %c0_i32 = arith.constant 0 : i32
    %0 = arith.cmpi eq, %arg1, %c0_i32 : i32
    %1 = arith.extui %0 : i1 to i32
    %c0_i32_0 = arith.constant 0 : i32
    %2 = arith.cmpi ne, %1, %c0_i32_0 : i32
    scf.if %2 {
      %c0_8 = arith.constant 0 : index
      %c0_9 = arith.constant 0 : index
      %10 = vector.load %arg2[%c0_8, %c0_9] : memref<16x128xf32, #tpu.memory_space<vmem>>, vector<16x128xf32>
      %cst_10 = arith.constant dense<0.000000e+00> : vector<16xf32>
      %11 = vector.multi_reduction <add>, %10, %cst_10 [1] : vector<16x128xf32> to vector<16xf32>
      %12 = vector.shape_cast %11 : vector<16xf32> to vector<16x1xf32>
      %cst_11 = arith.constant 3.125000e-02 : f32
      %13 = vector.broadcast %cst_11 : f32 to vector<16x1xf32>
      %14 = arith.mulf %12, %13 : vector<16x1xf32>
      %15 = vector.broadcast %14 : vector<16x1xf32> to vector<16x128xf32>
      %16 = arith.subf %10, %15 : vector<16x128xf32>
      %17 = arith.mulf %16, %16 : vector<16x128xf32>
      %cst_12 = arith.constant dense<0.000000e+00> : vector<16xf32>
      %18 = vector.multi_reduction <add>, %17, %cst_12 [1] : vector<16x128xf32> to vector<16xf32>
      %19 = vector.shape_cast %18 : vector<16xf32> to vector<16x1xf32>
      %20 = arith.mulf %14, %14 : vector<16x1xf32>
      %cst_13 = arith.constant 9.600000e+01 : f32
      %21 = vector.broadcast %cst_13 : f32 to vector<16x1xf32>
      %22 = arith.mulf %21, %20 : vector<16x1xf32>
      %23 = arith.subf %19, %22 : vector<16x1xf32>
      %cst_14 = arith.constant 3.125000e-02 : f32
      %24 = vector.broadcast %cst_14 : f32 to vector<16x1xf32>
      %25 = arith.mulf %23, %24 : vector<16x1xf32>
      %cst_15 = arith.constant 0.000000e+00 : f32
      %26 = vector.broadcast %cst_15 : f32 to vector<16x1xf32>
      %27 = arith.maximumf %25, %26 : vector<16x1xf32>
      %cst_16 = arith.constant 9.99999974E-6 : f32
      %28 = vector.broadcast %cst_16 : f32 to vector<16x1xf32>
      %29 = arith.addf %27, %28 : vector<16x1xf32>
      %30 = math.rsqrt %29 : vector<16x1xf32>
      %31 = vector.broadcast %30 : vector<16x1xf32> to vector<16x128xf32>
      %32 = arith.mulf %16, %31 : vector<16x128xf32>
      %c0_17 = arith.constant 0 : index
      %c0_18 = arith.constant 0 : index
      %33 = vector.load %arg3[%c0_17, %c0_18] : memref<1x128xf32, #tpu.memory_space<vmem>>, vector<1x128xf32>
      %34 = vector.broadcast %33 : vector<1x128xf32> to vector<16x128xf32>
      %35 = arith.mulf %32, %34 : vector<16x128xf32>
      %c0_19 = arith.constant 0 : index
      %c0_20 = arith.constant 0 : index
      %36 = vector.load %arg4[%c0_19, %c0_20] : memref<1x128xf32, #tpu.memory_space<vmem>>, vector<1x128xf32>
      %37 = vector.broadcast %36 : vector<1x128xf32> to vector<16x128xf32>
      %38 = arith.addf %35, %37 : vector<16x128xf32>
      %39 = arith.truncf %38 : vector<16x128xf32> to vector<16x128xbf16>
      %c0_21 = arith.constant 0 : index
      %c0_22 = arith.constant 0 : index
      %40 = vector.load %arg8[%c0_21, %c0_22] : memref<16x128xbf16, #tpu.memory_space<vmem>>, vector<16x128xbf16>
      tpu.vector_store %arg8[%c0_21, %c0_22], %39 {strides = array<i32>} : memref<16x128xbf16, #tpu.memory_space<vmem>>, vector<16x128xbf16>,
    } else {
    }
    %c0 = arith.constant 0 : index
    %c0_1 = arith.constant 0 : index
    %3 = vector.load %arg8[%c0, %c0_1] : memref<16x128xbf16, #tpu.memory_space<vmem>>, vector<16x128xbf16>
    %c0_2 = arith.constant 0 : index
    %c0_3 = arith.constant 0 : index
    %4 = vector.load %arg5[%c0_2, %c0_3] : memref<128x128xbf16, #tpu.memory_space<vmem>>, vector<128x128xbf16>
    %cst = arith.constant dense<0.000000e+00> : vector<16x128xf32>
    %5 = tpu.matmul %3, %4, %cst {dimension_numbers = #tpu.dot_dimension_numbers<[1], [0], [0], [1], [0, 0, 1, 1], [], []>} : vector<16x128xbf16>, vector<128x128xbf16>, vector<16x128xf32> -> vector<16x128xf32>
    %c0_4 = arith.constant 0 : index
    %c0_5 = arith.constant 0 : index
    %6 = vector.load %arg6[%c0_4, %c0_5] : memref<1x128xf32, #tpu.memory_space<vmem>>, vector<1x128xf32>
    %7 = vector.broadcast %6 : vector<1x128xf32> to vector<16x128xf32>
    %8 = arith.addf %5, %7 : vector<16x128xf32>
    %c0_6 = arith.constant 0 : index
    %c0_7 = arith.constant 0 : index
    %9 = vector.load %arg7[%c0_6, %c0_7] : memref<16x128xf32, #tpu.memory_space<vmem>>, vector<16x128xf32>
    tpu.vector_store %arg7[%c0_6, %c0_7], %8 {strides = array<i32>} : memref<16x128xf32, #tpu.memory_space<vmem>>, vector<16x128xf32>,
    return
  }
  func.func @transform_0(%arg0: i32, %arg1: i32) -> (i32, i32) {
    %c0_i32 = arith.constant 0 : i32
    %c0_i32_0 = arith.constant 0 : i32
    return %arg0, %c0_i32 : i32, i32
  }
  func.func @transform_1(%arg0: i32, %arg1: i32) -> (i32, i32) {
    %c0_i32 = arith.constant 0 : i32
    %c0_i32_0 = arith.constant 0 : i32
    %c0_i32_1 = arith.constant 0 : i32
    return %c0_i32, %c0_i32_0 : i32, i32
  }
  func.func @transform_2(%arg0: i32, %arg1: i32) -> (i32, i32) {
    %c0_i32 = arith.constant 0 : i32
    %c0_i32_0 = arith.constant 0 : i32
    %c0_i32_1 = arith.constant 0 : i32
    return %c0_i32, %c0_i32_0 : i32, i32
  }
  func.func @transform_3(%arg0: i32, %arg1: i32) -> (i32, i32) {
    %c0_i32 = arith.constant 0 : i32
    %c0_i32_0 = arith.constant 0 : i32
    return %c0_i32, %arg1 : i32, i32
  }
  func.func @transform_4(%arg0: i32, %arg1: i32) -> (i32, i32) {
    %c0_i32 = arith.constant 0 : i32
    %c0_i32_0 = arith.constant 0 : i32
    return %c0_i32, %arg1 : i32, i32
  }
  func.func @transform_5(%arg0: i32, %arg1: i32) -> (i32, i32) {
    %c0_i32 = arith.constant 0 : i32
    return %arg0, %arg1 : i32, i32
  }
}

</mosaic_0001>

<bundles_post_ra>
// kernel: tpu_custom_call.1
= control target key start
LH: loop header
LB: loop body
LE: loop exit
PB: predicated region body
PF: predicated region fallthrough
CT: control target
= control target key end

     0   :  { %10 = vsyncpa [#allocation4], 0  ;;  %s462_s0 = inlined_call_operand.hbm [shape: f32[16,128], index: 0, kind: input, shape index: {}]   ;;  %s463_s1 = inlined_call_operand.vmem [shape: f32[1,128], index: 1, kind: input, shape index: {}]   ;;  %s464_s2 = inlined_call_operand.vmem [shape: f32[1,128], index: 2, kind: input, shape index: {}]   ;;  %s465_s3 = inlined_call_operand.hbm [shape: bf16[128,128], index: 3, kind: input, shape index: {}]   ;;  %s466_s4 = inlined_call_operand.vmem [shape: f32[1,128], index: 4, kind: input, shape index: {}]   ;;  %s467_s5 = inlined_call_operand.hbm [shape: f32[16,128], index: 5, kind: output, shape index: {}]  }
   0x1   :  { %11 = vsyncpa [#allocation7], 0 }
   0x2   :  { %12 = vsyncpa [#allocation5], 0  ;;  %s372_s18 = smov [#allocation3]   ;;  %s300_s22 = scalar_lea.hbm %s462_s0, 256 }
   0x3   :  { %s18_s19 = sshll.u32 %s372_s18, 4  ;;  %p301_p0 = scmp.ne.s32.totalorder %s462_s0, %s300_s22  ;;  %s19_s19 = int_to_ptr.vmem [resolvable:$true] %s18_s19 }
   0x4   :  { %p304_p1 = scmp.lt.u32.totalorder %s300_s22, %s462_s0 }
   0x6   :  { %p306_p2 = pnand %p304_p1, %p301_p0 }
   0x8   :  { %309 = shalt.err (!%p306_p2)
}
   0x9   :  { %s310_s27 = scalar_lea.vmem %s19_s19, 256  ;;  %p315_p4 = scmp.lt.s32.totalorder %s19_s19, %s19_s19 }
   0xa   :  { %p311_p3 = scmp.ne.s32.totalorder %s19_s19, %s310_s27  ;;  %p316_p5 = scmp.lt.s32.totalorder %s310_s27, %s310_s27 }
   0xc   :  { %p317_p6 = por %p316_p5, %p315_p4 }
   0xe   :  { %p318_p7 = pnand %p317_p6, %p311_p3 }
  0x10   :  { %321 = shalt.err (!%p318_p7)
}
  0x11   :  { %s373_s28 = smov 128   ;;  %s374_s29 = smov 8  }
  0x12   :  { %24 = dma.hbm_to_vmem [thread:$0]  %s462_s0, 256, %s19_s19, [#allocation4], %s373_s28, %s373_s28, %s374_s29  }
  0x13   :  { %s375_s7 = smov [#allocation6]   ;;  %s322_s11 = scalar_lea.hbm %s465_s3, 1024 }
  0x14   :  { %s34_s8 = sshll.u32 %s375_s7, 4  ;;  %p323_p8 = scmp.ne.s32.totalorder %s465_s3, %s322_s11  ;;  %s35_s8 = int_to_ptr.vmem [resolvable:$true] %s34_s8 }
  0x15   :  { %p326_p9 = scmp.lt.u32.totalorder %s322_s11, %s465_s3 }
  0x17   :  { %p328_p10 = pnand %p326_p9, %p323_p8 }
  0x19   :  { %331 = shalt.err (!%p328_p10)
}
  0x1a   :  { %s332_s16 = scalar_lea.vmem %s35_s8, 1024  ;;  %p337_p12 = scmp.lt.s32.totalorder %s35_s8, %s35_s8 }
  0x1b   :  { %p333_p11 = scmp.ne.s32.totalorder %s35_s8, %s332_s16  ;;  %p338_p13 = scmp.lt.s32.totalorder %s332_s16, %s332_s16 }
  0x1d   :  { %p339_p0 = por %p338_p13, %p337_p12 }
  0x1f   :  { %p340_p1 = pnand %p339_p0, %p333_p11 }
  0x21   :  { %343 = shalt.err (!%p340_p1)
}
  0x22   :  { %s376_s0 = smov 64   ;;  %s377_s17 = smov 4  }
  0x23   :  { %40 = dma.hbm_to_vmem [thread:$0]  %s465_s3, 1024, %s35_s8, [#allocation7], %s376_s0, %s376_s0, %s377_s17  }
  0x24   :  { %366 = dma.done.wait [#allocation4], 256  }
  0x25   :  { %367 = vsyncadd [#allocation4], 4294967040 }
  0x26   :  { %368 = dma.done.wait [#allocation7], 1024  }
  0x27   :  { %369 = vsyncadd [#allocation7], 4294966272  ;;  %v54_v0 = vld [vmem:[#allocation3] sm:$0xff]  ;;  %v55_v1 = vld [vmem:[#allocation3 + $0x8] sm:$0xff]  ;;  %v378_v2 = vmov 0.0   ;;  %vm379_vm0 = vmmov 0  }
  0x28   :  { %56 = vadd.xlane.f32.xlu0 %v54_v0  ;;  %259 = vmatprep.subr.bf16.mxu0 %v378_v2  ;;  %v288_v11 = vld [vmem:[#allocation6] sm:$0xff]   ;;  %v289_v12 = vld [vmem:[#allocation6 + $0x8] sm:$0xff]   ;;  %v290_v13 = vld [vmem:[#allocation6 + $0x10] sm:$0xff]   ;;  %s380_s25 = smov [#allocation8]  }
  0x29   :  { %260 = vmatpush3.bf16.msra.mxu0 %v288_v11  ;;  %v291_v14 = vld [vmem:[#allocation6 + $0x18] sm:$0xff]   ;;  %v292_v15 = vld [vmem:[#allocation6 + $0x20] sm:$0xff]   ;;  %275 = vmatprep.mubr.msk.bf16.mxu0 %vm379_vm0, %v378_v2  ;;  %v293_v16 = vld [vmem:[#allocation6 + $0x28] sm:$0xff]   ;;  %s226_s26 = sshll.u32 %s380_s25, 4  ;;  %s227_s26 = int_to_ptr.vmem [resolvable:$true] %s226_s26 }
  0x2a   :  { %261 = vmatprep.subr.bf16.mxu0 %v378_v2  ;;  %v294_v17 = vld [vmem:[#allocation6 + $0x30] sm:$0xff]   ;;  %v295_v18 = vld [vmem:[#allocation6 + $0x38] sm:$0xff]   ;;  %p349_p3 = scmp.lt.s32.totalorder %s227_s26, %s227_s26 }
  0x2b   :  { %v239_v35 = vld [vmem:[%s463_s1] ss:$0 sm:$0xff]  ;;  %s344_s1 = scalar_lea.vmem %s227_s26, 256 }
  0x2c   :  { %58 = vadd.xlane.f32.xlu0 %v55_v1  ;;  %v240_v39 = vld [vmem:[%s464_s2] ss:$0 sm:$0xff]  ;;  %p345_p2 = scmp.ne.s32.totalorder %s227_s26, %s344_s1  ;;  %p350_p4 = scmp.lt.s32.totalorder %s344_s1, %s344_s1 }
  0x2d   :  { %262 = vmatpush3.bf16.msra.mxu0 %v289_v12  ;;  %v241_v44 = vld [vmem:[%s466_s4] ss:$0 sm:$0xff] }
  0x2e   :  { %263 = vmatprep.subr.bf16.mxu0 %v378_v2  ;;  %p351_p5 = por %p350_p4, %p349_p3 }
  0x30   :  { %p352_p6 = pnand %p351_p5, %p345_p2 }
  0x31   :  { %264 = vmatpush3.bf16.msra.mxu0 %v290_v13 }
  0x32   :  { %265 = vmatprep.subr.bf16.mxu0 %v378_v2 }
  0x35   :  { %266 = vmatpush3.bf16.msra.mxu0 %v291_v14 }
  0x36   :  { %267 = vmatprep.subr.bf16.mxu0 %v378_v2 }
  0x39   :  { %268 = vmatpush3.bf16.msra.mxu0 %v292_v15 }
  0x3a   :  { %269 = vmatprep.subr.bf16.mxu0 %v378_v2 }
  0x3d   :  { %270 = vmatpush3.bf16.msra.mxu0 %v293_v16 }
  0x3e   :  { %271 = vmatprep.subr.bf16.mxu0 %v378_v2 }
  0x41   :  { %272 = vmatpush3.bf16.msra.mxu0 %v294_v17 }
  0x42   :  { %273 = vmatprep.subr.bf16.mxu0 %v378_v2 }
  0x45   :  { %274 = vmatpush3.bf16.msra.mxu0 %v295_v18 }
  0xb5   :  { %v57_v3 = vpop.xlane.xlu0 %56 }
  0xb6   :  { %v60_v4 = vmul.f32 0.03125, %v57_v3 }
  0xb8   :  { %v62_v5 = vsub.f32 %v54_v0, %v60_v4  ;;  %v70_v19 = vmul.f32 %v60_v4, %v60_v4 }
  0xb9   :  { %v59_v6 = vpop.xlane.xlu0 %58 }
  0xba   :  { %v61_v7 = vmul.f32 0.03125, %v59_v6  ;;  %v64_v8 = vmul.f32 %v62_v5, %v62_v5  ;;  %v72_v21 = vmul.f32 96.0, %v70_v19 }
  0xbc   :  { %v63_v9 = vsub.f32 %v55_v1, %v61_v7  ;;  %66 = vadd.xlane.f32.xlu1 %v64_v8  ;;  %v71_v20 = vmul.f32 %v61_v7, %v61_v7 }
  0xbe   :  { %v65_v10 = vmul.f32 %v63_v9, %v63_v9  ;;  %v73_v24 = vmul.f32 96.0, %v71_v20 }
  0xc0   :  { %68 = vadd.xlane.f32.xlu1 %v65_v10 }
 0x149   :  { %v67_v22 = vpop.xlane.xlu1 %66 }
 0x14a   :  { %v74_v23 = vsub.f32 %v67_v22, %v72_v21 }
 0x14c   :  { %v76_v25 = vmul.f32 0.03125, %v74_v23 }
 0x14d   :  { %v69_v26 = vpop.xlane.xlu1 %68 }
 0x14e   :  { %v78_v27 = vmax.f32 %v76_v25, 0.0  ;;  %v75_v28 = vsub.f32 %v69_v26, %v73_v24 }
 0x150   :  { %v80_v29 = vadd.f32 1e-05, %v78_v27  ;;  %v77_v30 = vmul.f32 0.03125, %v75_v28 }
 0x152   :  { %296 = vrsqrt.f32 %v80_v29  ;;  %v79_v31 = vmax.f32 %v77_v30, 0.0 }
 0x154   :  { %v81_v32 = vadd.f32 1e-05, %v79_v31 }
 0x156   :  { %298 = vrsqrt.f32 %v81_v32 }
 0x15c   :  { %v297_v33 = vpop.eup %296 }
 0x15d   :  { %v84_v34 = vmul.f32 %v297_v33, %v62_v5 }
 0x15f   :  { %v93_v38 = vmul.f32 %v239_v35, %v84_v34 }
 0x160   :  { %v299_v36 = vpop.eup %298 }
 0x161   :  { %v85_v37 = vmul.f32 %v299_v36, %v63_v9  ;;  %v102_v41 = vadd.f32 %v240_v39, %v93_v38 }
 0x163   :  { %v94_v40 = vmul.f32 %v239_v35, %v85_v37 }
 0x165   :  { %v103_v42 = vadd.f32 %v240_v39, %v94_v40 }
 0x167   :  { %v104_v43 = vpack.c.bf16 %v103_v42, %v102_v41 }
 0x169   :  { %276 = vmatmul.mubr.bf16.vlgmr.msra.gmra.mrb[0].mxu0 %v104_v43 }
 0x23c   :  { %v212_v45 = vpop.f32.mrb[0].mxu0 }
 0x23d   :  { %v213_v46 = vadd.f32 %v241_v44, %v212_v45  ;;  %v277_v47 = vpop.f32.mrb[1].mxu0 }
 0x23e   :  { %v215_v48 = vpop.f32.mrb[2].mxu0 }
 0x23f   :  { %219 = vst [vmem:[#allocation8] sm:$0xff] %v213_v46  ;;  %v216_v49 = vadd.f32 %v241_v44, %v215_v48  ;;  %v278_v50 = vpop.f32.mrb[3].mxu0 }
 0x241   :  { %220 = vst [vmem:[#allocation8 + $0x8] sm:$0xff] %v216_v49 }
 0x242   :  { %355 = shalt.err (!%p352_p6)
}
 0x243   :  { %s356_s27 = scalar_lea.hbm %s467_s5, 256 }
 0x244   :  { %p357_p7 = scmp.ne.s32.totalorder %s467_s5, %s356_s27  ;;  %p360_p8 = scmp.lt.u32.totalorder %s356_s27, %s467_s5 }
 0x246   :  { %p362_p9 = pnand %p360_p8, %p357_p7 }
 0x248   :  { %365 = shalt.err (!%p362_p9)
}
 0x249   :  { %232 = dma.vmem_to_hbm [thread:$0]  %s227_s26, 256, %s467_s5, [#allocation5], %s373_s28, %s373_s28, %s374_s29  }
 0x24a   :  { %370 = dma.done.wait [#allocation5], 256  }
 0x24b   :  { %371 = vsyncadd [#allocation5], 4294967040 }
 0x24c   :  { %236 = vsyncpa [#allocation4], 1 }
 0x24d   :  { %237 = vsyncpa [#allocation7], 1 }
 0x24e   :  { %238 = vsyncpa [#allocation5], 1 }

</bundles_post_ra>
